<compile_context>
chip_gen: v7x
topology: tpu7x:2x2x1
jax: 0.10.0
libtpu: 0.0.40
codegen_flags: <defaults>
</compile_context>

<pallas_src>
import functools

import jax
import jax.numpy as jnp
from jax.experimental import pallas as pl
from jax.experimental.pallas import tpu as pltpu


# ----------------------------------------------------------------------------
# Kernel: one grid step = transposed conv of B samples via 3 MXU matmuls.
# ----------------------------------------------------------------------------
def _upconv_kernel(*refs, BH, BDH, with_stats):
    """x block : (1, (D+1)*B*H, KW)  rows = (input depth d, sample b, input row h),
                                     lanes = (h-shift s, ci, iw); depth D is a zero pad.
       w block : (3, KW, LN)         one dense stride-2 scatter matrix per depth tap kd,
                                     lanes = (oh-parity ph, co, ow).
       y block : (1, 2, B*D*H, LN)   axis 1 = output-depth parity (even / odd).
       stats   : (1, 1, LN) partial sum / sum-of-squares (BN path only).
    """
    if with_stats:
        x_ref, w_ref, o_ref, s_ref, q_ref = refs
    else:
        x_ref, w_ref, o_ref = refs

    xt = x_ref[0]                    # ((D+1)*B*H, KW), bf16
    lo = xt[:BDH, :]                 # input depths 0 .. D-1  (rows ordered (d, b, h))
    hi = xt[BH:, :]                  # input depths 1 .. D    (depth D == zero pad)

    # output depth 2d   <- x[d] @ W[kd=1]
    # output depth 2d+1 <- x[d] @ W[kd=2] + x[d+1] @ W[kd=0]
    even = jnp.dot(lo, w_ref[1], preferred_element_type=jnp.float32)
    odd = (jnp.dot(lo, w_ref[2], preferred_element_type=jnp.float32)
           + jnp.dot(hi, w_ref[0], preferred_element_type=jnp.float32))

    o_ref[0, 0, :, :] = even
    o_ref[0, 1, :, :] = odd

    if with_stats:
        s_ref[0] = (jnp.sum(even, axis=0, keepdims=True)
                    + jnp.sum(odd, axis=0, keepdims=True))
        q_ref[0] = (jnp.sum(even * even, axis=0, keepdims=True)
                    + jnp.sum(odd * odd, axis=0, keepdims=True))


# ----------------------------------------------------------------------------
# Host-side wrapper (jitted so the affine+ReLU+relayout epilogue fuses into one pass).
# ----------------------------------------------------------------------------
@functools.partial(jax.jit, static_argnames=("non_linear", "eps"))
def upsample_conv_block_3d(x, weight, bias, gamma, beta, *, non_linear=True, eps=1e-5):
    """ConvTranspose3d(C->C, k=3, stride=2, pad=1, out_pad=1) [+ BatchNorm3d + ReLU].

    x:      (N, C, D, H, W) float32
    weight: (C, C, 3, 3, 3)  PyTorch ConvTranspose3d layout (in, out, kD, kH, kW)
    bias:   (C,) ; gamma/beta: (C,) BatchNorm affine parameters.
    Returns (N, C, 2D, 2H, 2W) float32 (NCDHW, matching PyTorch).
    """
    N, C, D, H, W = x.shape
    Do, Ho, Wo = 2 * D, 2 * H, 2 * W
    Wp = W + 1
    KW = 2 * C * Wp          # matmul contraction lanes: (h-shift s, ci, iw)
    LN = 2 * C * Wo          # matmul output lanes:      (oh-parity ph, co, ow)  (256 in the test)

    # --- block batching: fold B samples into the matmul M dim (target B*D*H >= 256) -----
    B = min(N, max(1, -(-256 // (D * H))))
    Ng = -(-N // B)          # grid length
    Np = Ng * B              # batch padded to a multiple of B (zero samples are harmless)
    BH = B * H
    BDH = B * D * H

    x32 = x.astype(jnp.float32)
    w32 = weight.astype(jnp.float32)

    # --- input prep (O(|x|); x is ~8x smaller than y) -----------------------------------
    # zero pad one plane/row/column at the far end of D/H/W + pad the batch to Np.
    xp = jnp.pad(x32, ((0, Np - N), (0, 0), (0, 1), (0, 1), (0, 1)))   # (Np, C, D+1, H+1, W+1)
    xs = jnp.stack([xp[:, :, :, 0:H, :],                               # rows h     (s = 0)
                    xp[:, :, :, 1:H + 1, :]], axis=2)                  # rows h + 1 (s = 1)
    xr = xs.transpose(0, 3, 4, 2, 1, 5)                                # (Np, D+1, H, 2, C, Wp)
    # regroup rows as (d, b, h) so lo/hi depth shifts are contiguous sublane slices in-kernel
    xr = xr.reshape(Ng, B, D + 1, H, KW).transpose(0, 2, 1, 3, 4)      # (Ng, D+1, B, H, KW)
    xr = xr.reshape(Ng, (D + 1) * BH, KW).astype(jnp.bfloat16)

    # --- weight prep: Wcat[kd][(s,ci,iw), (ph,co,ow)] = W[ci,co,kd,kh,kw] ----------------
    #     with kh = ph + 1 - 2*s and kw = ow + 1 - 2*iw (valid 0..2, else 0).
    kh = jnp.arange(2)[None, :] + 1 - 2 * jnp.arange(2)[:, None]       # (s, ph)
    kw = jnp.arange(Wo)[None, :] + 1 - 2 * jnp.arange(Wp)[:, None]     # (iw, ow)
    kh_ok = (kh >= 0) & (kh <= 2)
    kw_ok = (kw >= 0) & (kw <= 2)
    wg = jnp.take(w32, jnp.clip(kh, 0, 2).reshape(-1), axis=3)         # (C, C, 3, 4, 3)
    wg = wg.reshape(C, C, 3, 2, 2, 3)                                  # (ci, co, kd, s, ph, kw)
    wg = jnp.take(wg, jnp.clip(kw, 0, 2).reshape(-1), axis=5)          # (C, C, 3, 2, 2, Wp*Wo)
    wg = wg.reshape(C, C, 3, 2, 2, Wp, Wo)                             # (ci, co, kd, s, ph, iw, ow)
    wg = wg * kh_ok[None, None, None, :, :, None, None]
    wg = wg * kw_ok[None, None, None, None, None, :, :]
    w_all = wg.transpose(2, 3, 0, 5, 4, 1, 6).reshape(3, KW, LN).astype(jnp.bfloat16)

    grid = (Ng,)
    cparams = pltpu.CompilerParams(
        dimension_semantics=("parallel",),                             # megacore-safe on v7x
        vmem_limit_bytes=32 * 1024 * 1024)                             # ~1.6 MiB actually used
    x_spec = pl.BlockSpec((1, (D + 1) * BH, KW), lambda g: (g, 0, 0))
    w_spec = pl.BlockSpec((3, KW, LN), lambda g: (0, 0, 0))
    y_spec = pl.BlockSpec((1, 2, BDH, LN), lambda g: (g, 0, 0, 0))
    stat_spec = pl.BlockSpec((1, 1, LN), lambda g: (g, 0, 0))

    if non_linear:
        # ---- single pass: conv output + per-step partial BN statistics ----------------
        y_conv, psum, pssq = pl.pallas_call(
            functools.partial(_upconv_kernel, BH=BH, BDH=BDH, with_stats=True),
            out_shape=(jax.ShapeDtypeStruct((Ng, 2, BDH, LN), jnp.float32),
                       jax.ShapeDtypeStruct((Ng, 1, LN), jnp.float32),
                       jax.ShapeDtypeStruct((Ng, 1, LN), jnp.float32)),
            grid=grid,
            in_specs=[x_spec, w_spec],
            out_specs=(y_spec, stat_spec, stat_spec),
            compiler_params=cparams,
        )(xr, w_all)

        cnt = jnp.float32(N * Do * Ho * Wo)   # true count: zero-padded samples contribute 0
        ch_sum = psum.reshape(Ng, 2, C, Wo).sum(axis=(0, 1, 3))        # (C,)
        ch_ssq = pssq.reshape(Ng, 2, C, Wo).sum(axis=(0, 1, 3))        # (C,)
        mean = ch_sum / cnt
        var = jnp.maximum(ch_ssq / cnt - mean * mean, 0.0)             # clamp cancellation
        invstd = jax.lax.rsqrt(var + eps)
        scale = gamma.astype(jnp.float32) * invstd
        # conv bias intentionally omitted: it cancels exactly against the BN mean.
        shift = beta.astype(jnp.float32) - mean * scale
        relu = True
    else:
        y_conv = pl.pallas_call(
            functools.partial(_upconv_kernel, BH=BH, BDH=BDH, with_stats=False),
            out_shape=jax.ShapeDtypeStruct((Ng, 2, BDH, LN), jnp.float32),
            grid=grid,
            in_specs=[x_spec, w_spec],
            out_specs=y_spec,
            compiler_params=cparams,
        )(xr, w_all)
        scale = jnp.ones((C,), jnp.float32)
        shift = bias.astype(jnp.float32)
        relu = False

    # ---- fused XLA epilogue: per-channel affine (+ReLU) and relayout to NCDHW ----------
    scale_l = jnp.tile(jnp.repeat(scale, Wo), 2)                       # (LN,) lanes=(ph,co,ow)
    shift_l = jnp.tile(jnp.repeat(shift, Wo), 2)
    y = y_conv * scale_l + shift_l
    if relu:
        y = jnp.maximum(y, 0.0)
    # (g, pd, (d, b, h), (ph, co, ow)) -> (g, b, co, (d, pd), (h, ph), ow)
    y = y.reshape(Ng, 2, D, B, H, 2, C, Wo).transpose(0, 3, 6, 2, 1, 4, 5, 7)
    return y.reshape(Np, C, Do, Ho, Wo)[:N]


# ----------------------------------------------------------------------------
# Pure-JAX reference: ConvTranspose3d via lhs-dilated conv, train-mode BN, ReLU.
# ----------------------------------------------------------------------------
def _reference_forward(x, weight, bias, gamma, beta, eps=1e-5):
    C = x.shape[1]
    wconv = weight.transpose(1, 0, 2, 3, 4)[:, :, ::-1, ::-1, ::-1]    # OIDHW
    y = jax.lax.conv_general_dilated(
        x, wconv, window_strides=(1, 1, 1),
        padding=[(1, 2), (1, 2), (1, 2)], lhs_dilation=(2, 2, 2),
        dimension_numbers=("NCDHW", "OIDHW", "NCDHW"),
        precision=jax.lax.Precision.HIGHEST)
    y = y + bias.reshape(1, C, 1, 1, 1)
    mean = y.mean(axis=(0, 2, 3, 4), keepdims=True)
    var = y.var(axis=(0, 2, 3, 4), keepdims=True)
    y = (y - mean) * jax.lax.rsqrt(var + eps)
    y = gamma.reshape(1, C, 1, 1, 1) * y + beta.reshape(1, C, 1, 1, 1)
    return jnp.maximum(y, 0.0)


if __name__ == "__main__":
    key = jax.random.PRNGKey(0)
    k_x, k_w, k_b = jax.random.split(key, 3)

    N, C, D, H, W = 2, 8, 8, 8, 8
    x = jax.random.normal(k_x, (N, C, D, H, W), jnp.float32)

    # deterministic parameter init (shapes per the module's __init__)
    bound = 1.0 / float(jnp.sqrt(jnp.float32(C * 27)))
    weight = jax.random.uniform(k_w, (C, C, 3, 3, 3), jnp.float32, -bound, bound)
    bias = jax.random.uniform(k_b, (C,), jnp.float32, -bound, bound)
    gamma = jnp.ones((C,), jnp.float32)   # BatchNorm3d weight init
    beta = jnp.zeros((C,), jnp.float32)   # BatchNorm3d bias init

    # non_linear=True (ConvTranspose3d + BN + ReLU)
    y = upsample_conv_block_3d(x, weight, bias, gamma, beta)
    y = jax.block_until_ready(y)
    assert y.shape == (N, C, 2 * D, 2 * H, 2 * W), y.shape
    ref = jax.block_until_ready(_reference_forward(x, weight, bias, gamma, beta))
    # bf16 MXU operands (the MXU's native path) -> ~2^-8 relative input rounding, amplified
    # by the BN normalisation; reference runs at Precision.HIGHEST, hence the tolerance.
    assert jnp.allclose(y, ref, atol=3e-2, rtol=3e-2), float(jnp.abs(y - ref).max())

    # non_linear=False (ConvTranspose3d + bias only)
    y2 = jax.block_until_ready(
        upsample_conv_block_3d(x, weight, bias, gamma, beta, non_linear=False))
    wconv = weight.transpose(1, 0, 2, 3, 4)[:, :, ::-1, ::-1, ::-1]
    ref2 = jax.lax.conv_general_dilated(
        x, wconv, (1, 1, 1), [(1, 2)] * 3, lhs_dilation=(2, 2, 2),
        dimension_numbers=("NCDHW", "OIDHW", "NCDHW"),
        precision=jax.lax.Precision.HIGHEST) + bias.reshape(1, C, 1, 1, 1)
    assert jnp.allclose(y2, ref2, atol=2e-2, rtol=2e-2), float(jnp.abs(y2 - ref2).max())

    print("KERNEL_OK")
</pallas_src>

<mosaic_0001>
module attributes {stable_mosaic.version = 11 : i64} {
  func.func @_upconv_kernel(%arg0: i32, %arg1: memref<1x144x144xbf16, #tpu.memory_space<vmem>>, %arg2: memref<3x144x256xbf16, #tpu.memory_space<vmem>>, %arg3: memref<1x2x128x256xf32, #tpu.memory_space<vmem>>, %arg4: memref<1x1x256xf32, #tpu.memory_space<vmem>>, %arg5: memref<1x1x256xf32, #tpu.memory_space<vmem>>) attributes {dimension_semantics = [#tpu.dimension_semantics<parallel>], iteration_bounds = array<i64: 1>, scalar_prefetch = 0 : i64, scratch_operands = 0 : i64, tpu.core_type = #tpu.core_type<tc>, window_params = [{transform_indices = @transform_0, window_bounds = array<i64: 1, 144, 144>}, {pipeline_mode = #tpu.pipeline_mode<synchronous>, transform_indices = @transform_1, window_bounds = array<i64: 3, 144, 256>}, {transform_indices = @transform_2, window_bounds = array<i64: 1, 2, 128, 256>}, {transform_indices = @transform_3, window_bounds = array<i64: 1, 1, 256>}, {transform_indices = @transform_4, window_bounds = array<i64: 1, 1, 256>}]} {
    %c0 = arith.constant 0 : index
    %c0_0 = arith.constant 0 : index
    %c0_1 = arith.constant 0 : index
    %0 = vector.load %arg1[%c0, %c0_0, %c0_1] : memref<1x144x144xbf16, #tpu.memory_space<vmem>>, vector<1x144x144xbf16>
    %1 = vector.shape_cast %0 : vector<1x144x144xbf16> to vector<144x144xbf16>
    %2 = vector.extract_strided_slice %1 {offsets = [0, 0], sizes = [128, 144], strides = [1, 1]} : vector<144x144xbf16> to vector<128x144xbf16>
    %3 = vector.extract_strided_slice %1 {offsets = [16, 0], sizes = [128, 144], strides = [1, 1]} : vector<144x144xbf16> to vector<128x144xbf16>
    %c1 = arith.constant 1 : index
    %c0_2 = arith.constant 0 : index
    %c0_3 = arith.constant 0 : index
    %4 = vector.load %arg2[%c1, %c0_2, %c0_3] : memref<3x144x256xbf16, #tpu.memory_space<vmem>>, vector<1x144x256xbf16>
    %5 = vector.shape_cast %4 : vector<1x144x256xbf16> to vector<144x256xbf16>
    %cst = arith.constant dense<0.000000e+00> : vector<128x256xf32>
    %6 = tpu.matmul %2, %5, %cst {dimension_numbers = #tpu.dot_dimension_numbers<[1], [0], [0], [1], [0, 0, 1, 1], [], []>} : vector<128x144xbf16>, vector<144x256xbf16>, vector<128x256xf32> -> vector<128x256xf32>
    %c2 = arith.constant 2 : index
    %c0_4 = arith.constant 0 : index
    %c0_5 = arith.constant 0 : index
    %7 = vector.load %arg2[%c2, %c0_4, %c0_5] : memref<3x144x256xbf16, #tpu.memory_space<vmem>>, vector<1x144x256xbf16>
    %8 = vector.shape_cast %7 : vector<1x144x256xbf16> to vector<144x256xbf16>
    %cst_6 = arith.constant dense<0.000000e+00> : vector<128x256xf32>
    %9 = tpu.matmul %2, %8, %cst_6 {dimension_numbers = #tpu.dot_dimension_numbers<[1], [0], [0], [1], [0, 0, 1, 1], [], []>} : vector<128x144xbf16>, vector<144x256xbf16>, vector<128x256xf32> -> vector<128x256xf32>
    %c0_7 = arith.constant 0 : index
    %c0_8 = arith.constant 0 : index
    %c0_9 = arith.constant 0 : index
    %10 = vector.load %arg2[%c0_7, %c0_8, %c0_9] : memref<3x144x256xbf16, #tpu.memory_space<vmem>>, vector<1x144x256xbf16>
    %11 = vector.shape_cast %10 : vector<1x144x256xbf16> to vector<144x256xbf16>
    %cst_10 = arith.constant dense<0.000000e+00> : vector<128x256xf32>
    %12 = tpu.matmul %3, %11, %cst_10 {dimension_numbers = #tpu.dot_dimension_numbers<[1], [0], [0], [1], [0, 0, 1, 1], [], []>} : vector<128x144xbf16>, vector<144x256xbf16>, vector<128x256xf32> -> vector<128x256xf32>
    %13 = arith.addf %9, %12 : vector<128x256xf32>
    %c0_11 = arith.constant 0 : index
    %c0_12 = arith.constant 0 : index
    %c0_13 = arith.constant 0 : index
    %c0_14 = arith.constant 0 : index
    %14 = vector.load %arg3[%c0_11, %c0_12, %c0_13, %c0_14] : memref<1x2x128x256xf32, #tpu.memory_space<vmem>>, vector<1x1x128x256xf32>
    %15 = vector.shape_cast %14 : vector<1x1x128x256xf32> to vector<128x256xf32>
    %16 = vector.shape_cast %6 : vector<128x256xf32> to vector<1x1x128x256xf32>
    tpu.vector_store %arg3[%c0_11, %c0_12, %c0_13, %c0_14], %16 {strides = array<i32>} : memref<1x2x128x256xf32, #tpu.memory_space<vmem>>, vector<1x1x128x256xf32>,
    %c0_15 = arith.constant 0 : index
    %c1_16 = arith.constant 1 : index
    %c0_17 = arith.constant 0 : index
    %c0_18 = arith.constant 0 : index
    %17 = vector.load %arg3[%c0_15, %c1_16, %c0_17, %c0_18] : memref<1x2x128x256xf32, #tpu.memory_space<vmem>>, vector<1x1x128x256xf32>
    %18 = vector.shape_cast %17 : vector<1x1x128x256xf32> to vector<128x256xf32>
    %19 = vector.shape_cast %13 : vector<128x256xf32> to vector<1x1x128x256xf32>
    tpu.vector_store %arg3[%c0_15, %c1_16, %c0_17, %c0_18], %19 {strides = array<i32>} : memref<1x2x128x256xf32, #tpu.memory_space<vmem>>, vector<1x1x128x256xf32>,
    %cst_19 = arith.constant dense<0.000000e+00> : vector<256xf32>
    %20 = vector.multi_reduction <add>, %6, %cst_19 [0] : vector<128x256xf32> to vector<256xf32>
    %21 = vector.shape_cast %20 : vector<256xf32> to vector<1x256xf32>
    %cst_20 = arith.constant dense<0.000000e+00> : vector<256xf32>
    %22 = vector.multi_reduction <add>, %13, %cst_20 [0] : vector<128x256xf32> to vector<256xf32>
    %23 = vector.shape_cast %22 : vector<256xf32> to vector<1x256xf32>
    %24 = arith.addf %21, %23 : vector<1x256xf32>
    %c0_21 = arith.constant 0 : index
    %c0_22 = arith.constant 0 : index
    %c0_23 = arith.constant 0 : index
    %25 = vector.load %arg4[%c0_21, %c0_22, %c0_23] : memref<1x1x256xf32, #tpu.memory_space<vmem>>, vector<1x1x256xf32>
    %26 = vector.shape_cast %25 : vector<1x1x256xf32> to vector<1x256xf32>
    %27 = vector.shape_cast %24 : vector<1x256xf32> to vector<1x1x256xf32>
    tpu.vector_store %arg4[%c0_21, %c0_22, %c0_23], %27 {strides = array<i32>} : memref<1x1x256xf32, #tpu.memory_space<vmem>>, vector<1x1x256xf32>,
    %28 = arith.mulf %6, %6 : vector<128x256xf32>
    %cst_24 = arith.constant dense<0.000000e+00> : vector<256xf32>
    %29 = vector.multi_reduction <add>, %28, %cst_24 [0] : vector<128x256xf32> to vector<256xf32>
    %30 = vector.shape_cast %29 : vector<256xf32> to vector<1x256xf32>
    %31 = arith.mulf %13, %13 : vector<128x256xf32>
    %cst_25 = arith.constant dense<0.000000e+00> : vector<256xf32>
    %32 = vector.multi_reduction <add>, %31, %cst_25 [0] : vector<128x256xf32> to vector<256xf32>
    %33 = vector.shape_cast %32 : vector<256xf32> to vector<1x256xf32>
    %34 = arith.addf %30, %33 : vector<1x256xf32>
    %c0_26 = arith.constant 0 : index
    %c0_27 = arith.constant 0 : index
    %c0_28 = arith.constant 0 : index
    %35 = vector.load %arg5[%c0_26, %c0_27, %c0_28] : memref<1x1x256xf32, #tpu.memory_space<vmem>>, vector<1x1x256xf32>
    %36 = vector.shape_cast %35 : vector<1x1x256xf32> to vector<1x256xf32>
    %37 = vector.shape_cast %34 : vector<1x256xf32> to vector<1x1x256xf32>
    tpu.vector_store %arg5[%c0_26, %c0_27, %c0_28], %37 {strides = array<i32>} : memref<1x1x256xf32, #tpu.memory_space<vmem>>, vector<1x1x256xf32>,
    return
  }
  func.func @transform_0(%arg0: i32) -> (i32, i32, i32) {
    %c0_i32 = arith.constant 0 : i32
    %c0_i32_0 = arith.constant 0 : i32
    %c0_i32_1 = arith.constant 0 : i32
    return %arg0, %c0_i32, %c0_i32_0 : i32, i32, i32
  }
  func.func @transform_1(%arg0: i32) -> (i32, i32, i32) {
    %c0_i32 = arith.constant 0 : i32
    %c0_i32_0 = arith.constant 0 : i32
    %c0_i32_1 = arith.constant 0 : i32
    %c0_i32_2 = arith.constant 0 : i32
    return %c0_i32, %c0_i32_0, %c0_i32_1 : i32, i32, i32
  }
  func.func @transform_2(%arg0: i32) -> (i32, i32, i32, i32) {
    %c0_i32 = arith.constant 0 : i32
    %c0_i32_0 = arith.constant 0 : i32
    %c0_i32_1 = arith.constant 0 : i32
    %c0_i32_2 = arith.constant 0 : i32
    return %arg0, %c0_i32, %c0_i32_0, %c0_i32_1 : i32, i32, i32, i32
  }
  func.func @transform_3(%arg0: i32) -> (i32, i32, i32) {
    %c0_i32 = arith.constant 0 : i32
    %c0_i32_0 = arith.constant 0 : i32
    %c0_i32_1 = arith.constant 0 : i32
    return %arg0, %c0_i32, %c0_i32_0 : i32, i32, i32
  }
  func.func @transform_4(%arg0: i32) -> (i32, i32, i32) {
    %c0_i32 = arith.constant 0 : i32
    %c0_i32_0 = arith.constant 0 : i32
    %c0_i32_1 = arith.constant 0 : i32
    return %arg0, %c0_i32, %c0_i32_0 : i32, i32, i32
  }
}

</mosaic_0001>

<bundles_post_ra>
// kernel: upsample_conv_block_3d.1
= control target key start
LH: loop header
LB: loop body
LE: loop exit
PB: predicated region body
PF: predicated region fallthrough
CT: control target
= control target key end

     0   :  { %vm214_vm0 = vcmask 130048   ;;  %s2152_s1 = inlined_call_operand.vmem [shape: bf16[3,144,256], index: 1, kind: input, shape index: {}]   ;;  %s2153_s0 = inlined_call_operand.vmem [shape: bf16[1,144,144], index: 0, kind: input, shape index: {}]   ;;  %s2154_s2 = inlined_call_operand.vmem [shape: f32[1,2,128,256], index: 2, kind: output, shape index: {0}]   ;;  %s2155_s3 = inlined_call_operand.vmem [shape: f32[1,1,256], index: 3, kind: output, shape index: {1}]   ;;  %s2156_s4 = inlined_call_operand.vmem [shape: f32[1,1,256], index: 4, kind: output, shape index: {2}]  }
   0x1   :  { %v1377_v0 = vld [vmem:[%s2152_s1 + $0x94] ss:$8 sps:$4 sm:$0xff]   ;;  %v1379_v1 = vld [vmem:[%s2152_s1 + $0x4] ss:$8 sps:$4 sm:$0xff]   ;;  %v1381_v2 = vld [vmem:[%s2152_s1 + $0x90] ss:$8 sps:$4 sm:$0xff]  }
   0x2   :  { %239 = vmatprep.subr.bf16.mxu0 %v1377_v0  ;;  %v1382_v3 = vld [vmem:[%s2152_s1] ss:$8 sps:$4 sm:$0xff]   ;;  %491 = vmatprep.subr.bf16.mxu1 %v1379_v1  ;;  %v1383_v4 = vld [vmem:[%s2152_s1 + $0xa4] ss:$8 sps:$4 sm:$0xff]   ;;  %v1385_v5 = vld [vmem:[%s2152_s1 + $0x14] ss:$8 sps:$4 sm:$0xff]  }
   0x3   :  { %240 = vmatpush1.bf16.msra.mxu0 %v1381_v2  ;;  %492 = vmatpush1.bf16.msra.mxu1 %v1382_v3  ;;  %v1387_v6 = vld [vmem:[%s2152_s1 + $0xa0] ss:$8 sps:$4 sm:$0xff]   ;;  %v1388_v7 = vld [vmem:[%s2152_s1 + $0x10] ss:$8 sps:$4 sm:$0xff]   ;;  %v1389_v8 = vld [vmem:[%s2152_s1 + $0xb4] ss:$8 sps:$4 sm:$0xff]  }
   0x4   :  { %241 = vmatprep.subr.bf16.mxu0 %v1383_v4  ;;  %493 = vmatprep.subr.bf16.mxu1 %v1385_v5  ;;  %v1391_v9 = vld [vmem:[%s2152_s1 + $0x24] ss:$8 sps:$4 sm:$0xff]   ;;  %v1393_v10 = vld [vmem:[%s2152_s1 + $0xb0] ss:$8 sps:$4 sm:$0xff]   ;;  %v1394_v11 = vld [vmem:[%s2152_s1 + $0x20] ss:$8 sps:$4 sm:$0xff]  }
   0x5   :  { %v1395_v12 = vld [vmem:[%s2152_s1 + $0xc4] ss:$8 sps:$4 sm:$0xff]   ;;  %v1397_v13 = vld [vmem:[%s2152_s1 + $0x34] ss:$8 sps:$4 sm:$0xff]   ;;  %v1399_v14 = vld [vmem:[%s2152_s1 + $0xc0] ss:$8 sps:$4 sm:$0xff]  }
   0x6   :  { %v1400_v15 = vld [vmem:[%s2152_s1 + $0x30] ss:$8 sps:$4 sm:$0xff]   ;;  %v1401_v16 = vld [vmem:[%s2152_s1 + $0xd4] ss:$8 sps:$4 sm:$0xff]   ;;  %v1403_v17 = vld [vmem:[%s2152_s1 + $0x44] ss:$8 sps:$4 sm:$0xff]  }
   0x7   :  { %242 = vmatpush1.bf16.msra.mxu0 %v1387_v6  ;;  %494 = vmatpush1.bf16.msra.mxu1 %v1388_v7  ;;  %v1405_v18 = vld [vmem:[%s2152_s1 + $0xd0] ss:$8 sps:$4 sm:$0xff]   ;;  %v1406_v19 = vld [vmem:[%s2152_s1 + $0x40] ss:$8 sps:$4 sm:$0xff]   ;;  %v1407_v20 = vld [vmem:[%s2152_s1 + $0xe4] ss:$8 sps:$4 sm:$0xff]  }
   0x8   :  { %243 = vmatprep.subr.bf16.mxu0 %v1389_v8  ;;  %495 = vmatprep.subr.bf16.mxu1 %v1391_v9  ;;  %v1409_v21 = vld [vmem:[%s2152_s1 + $0x54] ss:$8 sps:$4 sm:$0xff]   ;;  %v1411_v22 = vld [vmem:[%s2152_s1 + $0xe0] ss:$8 sps:$4 sm:$0xff]   ;;  %v1412_v23 = vld [vmem:[%s2152_s1 + $0x50] ss:$8 sps:$4 sm:$0xff]  }
   0x9   :  { %v1413_v24 = vld [vmem:[%s2152_s1 + $0xf4] ss:$8 sps:$4 sm:$0xff]   ;;  %v1415_v25 = vld [vmem:[%s2152_s1 + $0x64] ss:$8 sps:$4 sm:$0xff]   ;;  %v1417_v26 = vld [vmem:[%s2152_s1 + $0xf0] ss:$8 sps:$4 sm:$0xff]  }
   0xa   :  { %v1418_v27 = vld [vmem:[%s2152_s1 + $0x60] ss:$8 sps:$4 sm:$0xff]   ;;  %v1419_v28 = vld [vmem:[%s2152_s1 + $0x104] ss:$8 sps:$4 sm:$0xff]   ;;  %v1421_v29 = vld [vmem:[%s2152_s1 + $0x74] ss:$8 sps:$4 sm:$0xff]  }
   0xb   :  { %244 = vmatpush1.bf16.msra.mxu0 %v1393_v10  ;;  %496 = vmatpush1.bf16.msra.mxu1 %v1394_v11  ;;  %v1604_v30 = vld [vmem:[%s2153_s0 + $0x4] ss:$8 sps:$4 sm:$0xff]   ;;  %v1609_v31 = vld [vmem:[%s2153_s0 + $0x14] ss:$8 sps:$4 sm:$0xff]   ;;  %v1423_v32 = vld [vmem:[%s2152_s1 + $0x100] ss:$8 sps:$4 sm:$0xff]  }
   0xc   :  { %245 = vmatprep.subr.bf16.mxu0 %v1395_v12  ;;  %497 = vmatprep.subr.bf16.mxu1 %v1397_v13  ;;  %v1424_v33 = vld [vmem:[%s2152_s1 + $0x70] ss:$8 sps:$4 sm:$0xff]   ;;  %v1425_v34 = vld [vmem:[%s2152_s1 + $0x114] ss:$8 sps:$4 sm:$0xff]   ;;  %v1427_v35 = vld [vmem:[%s2152_s1 + $0x84] ss:$8 sps:$4 sm:$0xff]  }
   0xd   :  { %1214 = vmatprep.mubr.msk.bf16.mxu0 %vm214_vm0, %v1604_v30  ;;  %1260 = vmatprep.mubr.msk.bf16.mxu1 %vm214_vm0, %v1609_v31  ;;  %v1429_v36 = vld [vmem:[%s2152_s1 + $0x110] ss:$8 sps:$4 sm:$0xff]   ;;  %v1430_v37 = vld [vmem:[%s2152_s1 + $0x80] ss:$8 sps:$4 sm:$0xff]   ;;  %v1439_v38 = vld [vmem:[%s2152_s1 + $0x124] ss:$8 sps:$4 sm:$0xff]  }
   0xe   :  { %v1639_v39 = vld [vmem:[%s2153_s0] ss:$8 sps:$4 sm:$0xff]   ;;  %v1644_v40 = vld [vmem:[%s2153_s0 + $0x10] ss:$8 sps:$4 sm:$0xff]   ;;  %v1652_v42 = vld [vmem:[%s2153_s0 + $0x24] ss:$8 sps:$4 sm:$0xff]  }
   0xf   :  { %246 = vmatpush1.bf16.msra.mxu0 %v1399_v14  ;;  %498 = vmatpush1.bf16.msra.mxu1 %v1400_v15  ;;  %v1437_v41 = vld [vmem:[%s2152_s1 + $0x120] ss:$8 sps:$4 sm:$0xff]   ;;  %v1445_v43 = vld [vmem:[%s2152_s1 + $0x134] ss:$8 sps:$4 sm:$0xff]   ;;  %v1443_v44 = vld [vmem:[%s2152_s1 + $0x130] ss:$8 sps:$4 sm:$0xff]  }
  0x10   :  { %247 = vmatprep.subr.bf16.mxu0 %v1401_v16  ;;  %499 = vmatprep.subr.bf16.mxu1 %v1403_v17  ;;  %v1450_v45 = vld [vmem:[%s2152_s1 + $0x144] ss:$8 sps:$4 sm:$0xff]   ;;  %v1672_v46 = vld [vmem:[%s2153_s0 + $0x20] ss:$8 sps:$4 sm:$0xff]   ;;  %v1677_v47 = vld [vmem:[%s2153_s0 + $0x34] ss:$8 sps:$4 sm:$0xff]  }
  0x11   :  { %v1448_v48 = vld [vmem:[%s2152_s1 + $0x140] ss:$8 sps:$4 sm:$0xff]   ;;  %v1454_v49 = vld [vmem:[%s2152_s1 + $0x154] ss:$8 sps:$4 sm:$0xff]   ;;  %v1452_v50 = vld [vmem:[%s2152_s1 + $0x150] ss:$8 sps:$4 sm:$0xff]  }
  0x12   :  { %v1460_v51 = vld [vmem:[%s2152_s1 + $0x164] ss:$8 sps:$4 sm:$0xff]   ;;  %v1700_v52 = vld [vmem:[%s2153_s0 + $0x30] ss:$8 sps:$4 sm:$0xff]   ;;  %v1458_v54 = vld [vmem:[%s2152_s1 + $0x160] ss:$8 sps:$4 sm:$0xff]  }
  0x13   :  { %248 = vmatpush1.bf16.msra.mxu0 %v1405_v18  ;;  %500 = vmatpush1.bf16.msra.mxu1 %v1406_v19  ;;  %v1705_v53 = vld [vmem:[%s2153_s0 + $0x44] ss:$8 sps:$4 sm:$0xff]   ;;  %v1466_v55 = vld [vmem:[%s2152_s1 + $0x174] ss:$8 sps:$4 sm:$0xff]   ;;  %v1464_v56 = vld [vmem:[%s2152_s1 + $0x170] ss:$8 sps:$4 sm:$0xff]  }
  0x14   :  { %249 = vmatprep.subr.bf16.mxu0 %v1407_v20  ;;  %501 = vmatprep.subr.bf16.mxu1 %v1409_v21  ;;  %v1472_v57 = vld [vmem:[%s2152_s1 + $0x184] ss:$8 sps:$4 sm:$0xff]   ;;  %v1457_v58 = vld [vmem:[%s2153_s0 + $0x40] ss:$8 sps:$4 sm:$0xff]   ;;  %v1461_v59 = vld [vmem:[%s2153_s0 + $0x54] ss:$8 sps:$4 sm:$0xff]  }
  0x15   :  { %v1470_v60 = vld [vmem:[%s2152_s1 + $0x180] ss:$8 sps:$4 sm:$0xff]   ;;  %v1478_v61 = vld [vmem:[%s2152_s1 + $0x194] ss:$8 sps:$4 sm:$0xff]   ;;  %v1476_v62 = vld [vmem:[%s2152_s1 + $0x190] ss:$8 sps:$4 sm:$0xff]  }
  0x16   :  { %v1484_v63 = vld [vmem:[%s2152_s1 + $0x1a4] ss:$8 sps:$4 sm:$0xff]   ;;  %v1463_v0 = vld [vmem:[%s2153_s0 + $0x50] ss:$8 sps:$4 sm:$0xff]   ;;  %v1482_v2 = vld [vmem:[%s2152_s1 + $0x1a0] ss:$8 sps:$4 sm:$0xff]  }
  0x17   :  { %250 = vmatpush1.bf16.msra.mxu0 %v1411_v22  ;;  %502 = vmatpush1.bf16.msra.mxu1 %v1412_v23  ;;  %v1467_v1 = vld [vmem:[%s2153_s0 + $0x64] ss:$8 sps:$4 sm:$0xff]   ;;  %v1469_v3 = vld [vmem:[%s2153_s0 + $0x60] ss:$8 sps:$4 sm:$0xff]   ;;  %v1473_v4 = vld [vmem:[%s2153_s0 + $0x74] ss:$8 sps:$4 sm:$0xff]  }
  0x18   :  { %251 = vmatprep.subr.bf16.mxu0 %v1413_v24  ;;  %503 = vmatprep.subr.bf16.mxu1 %v1415_v25  ;;  %v1475_v5 = vld [vmem:[%s2153_s0 + $0x70] ss:$8 sps:$4 sm:$0xff]   ;;  %v1479_v6 = vld [vmem:[%s2153_s0 + $0x84] ss:$8 sps:$4 sm:$0xff]   ;;  %v1481_v7 = vld [vmem:[%s2153_s0 + $0x80] ss:$8 sps:$4 sm:$0xff]  }
  0x1b   :  { %252 = vmatpush1.bf16.msra.mxu0 %v1417_v26  ;;  %504 = vmatpush1.bf16.msra.mxu1 %v1418_v27 }
  0x1c   :  { %253 = vmatprep.subr.bf16.mxu0 %v1419_v28  ;;  %505 = vmatprep.subr.bf16.mxu1 %v1421_v29 }
  0x1f   :  { %254 = vmatpush1.bf16.msra.mxu0 %v1423_v32  ;;  %506 = vmatpush1.bf16.msra.mxu1 %v1424_v33 }
  0x20   :  { %255 = vmatprep.subr.bf16.mxu0 %v1425_v34  ;;  %507 = vmatprep.subr.bf16.mxu1 %v1427_v35 }
  0x23   :  { %256 = vmatpush1.bf16.msra.mxu0 %v1429_v36  ;;  %508 = vmatpush1.bf16.msra.mxu1 %v1430_v37 }
  0x24   :  { %694 = vmatprep.subr.bf16.mxu0 %v1439_v38  ;;  %1326 = vmatprep.subr.bf16.mxu1 %v1439_v38 }
  0x26   :  { %272 = vmatmul.mubr.bf16.vlgmr.msra.gmra.mrb[0].mxu0 %v1639_v39  ;;  %524 = vmatmul.mubr.bf16.vlgmr.msra.gmra.mrb[0].mxu1 %v1644_v40 }
  0x27   :  { %695 = vmatpush1.bf16.msra.mxu0 %v1437_v41  ;;  %1215 = vmatprep.mubr.msk.bf16.mxu0 %vm214_vm0, %v1609_v31 }
  0x28   :  { %1261 = vmatprep.mubr.msk.bf16.mxu1 %vm214_vm0, %v1652_v42  ;;  %696 = vmatprep.subr.bf16.mxu0 %v1445_v43 }
  0x29   :  { %1335 = vmatpush1.bf16.msra.mxu1 %v1437_v41 }
  0x2a   :  { %1327 = vmatprep.subr.bf16.mxu1 %v1445_v43 }
  0x2b   :  { %697 = vmatpush1.bf16.msra.mxu0 %v1443_v44 }
  0x2c   :  { %698 = vmatprep.subr.bf16.mxu0 %v1450_v45 }
  0x2d   :  { %1336 = vmatpush1.bf16.msra.mxu1 %v1443_v44 }
  0x2e   :  { %282 = vmatmul.mubr.bf16.gmra.mrb[4].mxu0 %v1644_v40  ;;  %534 = vmatmul.mubr.bf16.gmra.mrb[4].mxu1 %v1672_v46 }
  0x2f   :  { %1216 = vmatprep.mubr.msk.bf16.mxu0 %vm214_vm0, %v1652_v42  ;;  %1262 = vmatprep.mubr.msk.bf16.mxu1 %vm214_vm0, %v1677_v47 }
  0x30   :  { %699 = vmatpush1.bf16.msra.mxu0 %v1448_v48  ;;  %1328 = vmatprep.subr.bf16.mxu1 %v1450_v45 }
  0x31   :  { %700 = vmatprep.subr.bf16.mxu0 %v1454_v49  ;;  %1337 = vmatpush1.bf16.msra.mxu1 %v1448_v48 }
  0x32   :  { %1329 = vmatprep.subr.bf16.mxu1 %v1454_v49 }
  0x34   :  { %701 = vmatpush1.bf16.msra.mxu0 %v1452_v50 }
  0x35   :  { %702 = vmatprep.subr.bf16.mxu0 %v1460_v51  ;;  %1338 = vmatpush1.bf16.msra.mxu1 %v1452_v50 }
  0x36   :  { %292 = vmatmul.mubr.bf16.gmra.mrb[8].mxu0 %v1672_v46  ;;  %544 = vmatmul.mubr.bf16.gmra.mrb[8].mxu1 %v1700_v52 }
  0x37   :  { %1217 = vmatprep.mubr.msk.bf16.mxu0 %vm214_vm0, %v1677_v47  ;;  %1263 = vmatprep.mubr.msk.bf16.mxu1 %vm214_vm0, %v1705_v53 }
  0x38   :  { %703 = vmatpush1.bf16.msra.mxu0 %v1458_v54  ;;  %1330 = vmatprep.subr.bf16.mxu1 %v1460_v51 }
  0x39   :  { %704 = vmatprep.subr.bf16.mxu0 %v1466_v55  ;;  %1339 = vmatpush1.bf16.msra.mxu1 %v1458_v54 }
  0x3a   :  { %1331 = vmatprep.subr.bf16.mxu1 %v1466_v55 }
  0x3c   :  { %705 = vmatpush1.bf16.msra.mxu0 %v1464_v56 }
  0x3d   :  { %706 = vmatprep.subr.bf16.mxu0 %v1472_v57  ;;  %1340 = vmatpush1.bf16.msra.mxu1 %v1464_v56 }
  0x3e   :  { %302 = vmatmul.mubr.bf16.gmra.mrb[12].mxu0 %v1700_v52  ;;  %554 = vmatmul.mubr.bf16.gmra.mrb[12].mxu1 %v1457_v58 }
  0x3f   :  { %1218 = vmatprep.mubr.msk.bf16.mxu0 %vm214_vm0, %v1705_v53  ;;  %1264 = vmatprep.mubr.msk.bf16.mxu1 %vm214_vm0, %v1461_v59 }
  0x40   :  { %707 = vmatpush1.bf16.msra.mxu0 %v1470_v60  ;;  %1332 = vmatprep.subr.bf16.mxu1 %v1472_v57 }
  0x41   :  { %708 = vmatprep.subr.bf16.mxu0 %v1478_v61  ;;  %1341 = vmatpush1.bf16.msra.mxu1 %v1470_v60 }
  0x42   :  { %1333 = vmatprep.subr.bf16.mxu1 %v1478_v61 }
  0x44   :  { %709 = vmatpush1.bf16.msra.mxu0 %v1476_v62 }
  0x45   :  { %1342 = vmatpush1.bf16.msra.mxu1 %v1476_v62  ;;  %710 = vmatprep.subr.bf16.mxu0 %v1484_v63 }
  0x46   :  { %312 = vmatmul.mubr.bf16.gmra.mrb[16].mxu0 %v1457_v58  ;;  %564 = vmatmul.mubr.bf16.gmra.mrb[16].mxu1 %v1463_v0 }
  0x47   :  { %1219 = vmatprep.mubr.msk.bf16.mxu0 %vm214_vm0, %v1461_v59  ;;  %1265 = vmatprep.mubr.msk.bf16.mxu1 %vm214_vm0, %v1467_v1 }
  0x48   :  { %711 = vmatpush1.bf16.msra.mxu0 %v1482_v2  ;;  %1334 = vmatprep.subr.bf16.mxu1 %v1484_v63 }
  0x49   :  { %1343 = vmatpush1.bf16.msra.mxu1 %v1482_v2 }
  0x4e   :  { %322 = vmatmul.mubr.bf16.gmra.mrb[20].mxu0 %v1463_v0  ;;  %574 = vmatmul.mubr.bf16.gmra.mrb[20].mxu1 %v1469_v3 }
  0x4f   :  { %1220 = vmatprep.mubr.msk.bf16.mxu0 %vm214_vm0, %v1467_v1  ;;  %1266 = vmatprep.mubr.msk.bf16.mxu1 %vm214_vm0, %v1473_v4 }
  0x56   :  { %332 = vmatmul.mubr.bf16.gmra.mrb[24].mxu0 %v1469_v3  ;;  %584 = vmatmul.mubr.bf16.gmra.mrb[24].mxu1 %v1475_v5 }
  0x57   :  { %1221 = vmatprep.mubr.msk.bf16.mxu0 %vm214_vm0, %v1473_v4  ;;  %1267 = vmatprep.mubr.msk.bf16.mxu1 %vm214_vm0, %v1479_v6 }
  0x5e   :  { %342 = vmatmul.mubr.bf16.gmra.mrb[28].mxu0 %v1475_v5  ;;  %594 = vmatmul.mubr.bf16.gmra.mrb[28].mxu1 %v1481_v7 }
  0x5f   :  { %1286 = vmatprep.mubr.msk.bf16.mxu0 %vm214_vm0, %v1604_v30  ;;  %1290 = vmatprep.mubr.msk.bf16.mxu1 %vm214_vm0, %v1705_v53 }
  0x66   :  { %727 = vmatmul.mubr.bf16.vlgmr.msra.gmra.mrb[32].mxu0 %v1639_v39  ;;  %767 = vmatmul.mubr.bf16.vlgmr.msra.gmra.mrb[16].mxu1 %v1457_v58 }
  0x67   :  { %1287 = vmatprep.mubr.msk.bf16.mxu0 %vm214_vm0, %v1609_v31  ;;  %1291 = vmatprep.mubr.msk.bf16.mxu1 %vm214_vm0, %v1461_v59 }
  0x6e   :  { %737 = vmatmul.mubr.bf16.gmra.mrb[36].mxu0 %v1644_v40  ;;  %777 = vmatmul.mubr.bf16.gmra.mrb[20].mxu1 %v1463_v0 }
  0x6f   :  { %1288 = vmatprep.mubr.msk.bf16.mxu0 %vm214_vm0, %v1652_v42  ;;  %1292 = vmatprep.mubr.msk.bf16.mxu1 %vm214_vm0, %v1467_v1 }
  0x76   :  { %747 = vmatmul.mubr.bf16.gmra.mrb[40].mxu0 %v1672_v46  ;;  %787 = vmatmul.mubr.bf16.gmra.mrb[24].mxu1 %v1469_v3 }
  0x77   :  { %1289 = vmatprep.mubr.msk.bf16.mxu0 %vm214_vm0, %v1677_v47  ;;  %1293 = vmatprep.mubr.msk.bf16.mxu1 %vm214_vm0, %v1473_v4 }
  0x7e   :  { %757 = vmatmul.mubr.bf16.gmra.mrb[44].mxu0 %v1700_v52  ;;  %797 = vmatmul.mubr.bf16.gmra.mrb[28].mxu1 %v1475_v5 }
  0xf9   :  { %v273_v8 = vpop.f32.mrb[0].mxu0  ;;  %v1794_v9 = vpop.f32.mrb[0].mxu1 }
  0xfa   :  { %807 = vst [vmem:[%s2154_s2] sm:$0xff] %v273_v8  ;;  %v275_v10 = vpop.f32.mrb[1].mxu0  ;;  %v1799_v11 = vpop.f32.mrb[1].mxu1  ;;  %v981_v14 = vmul.f32 %v273_v8, %v273_v8 }
  0xfb   :  { %808 = vst [vmem:[%s2154_s2 + $0x8] sm:$0xff] %v275_v10  ;;  %v277_v12 = vpop.f32.mrb[2].mxu0  ;;  %v1804_v13 = vpop.f32.mrb[2].mxu1  ;;  %v982_v19 = vmul.f32 %v275_v10, %v275_v10 }
  0xfc   :  { %809 = vst [vmem:[%s2154_s2 + $0x10] sm:$0xff] %v277_v12  ;;  %v872_v15 = vadd.f32 %v277_v12, %v273_v8  ;;  %v983_v16 = vmul.f32 %v277_v12, %v277_v12  ;;  %v279_v17 = vpop.f32.mrb[3].mxu0  ;;  %v1809_v18 = vpop.f32.mrb[3].mxu1 }
  0xfd   :  { %810 = vst [vmem:[%s2154_s2 + $0x18] sm:$0xff] %v279_v17  ;;  %v893_v20 = vadd.f32 %v279_v17, %v275_v10  ;;  %v984_v21 = vmul.f32 %v279_v17, %v279_v17 }
  0xfe   :  { %v1013_v22 = vadd.f32 %v983_v16, %v981_v14 }
  0xff   :  { %v1034_v23 = vadd.f32 %v984_v21, %v982_v19 }
 0x101   :  { %v283_v24 = vpop.f32.mrb[4].mxu0  ;;  %v1814_v25 = vpop.f32.mrb[4].mxu1 }
 0x102   :  { %811 = vst [vmem:[%s2154_s2 + $0x20] sm:$0xff] %v283_v24  ;;  %v873_v26 = vadd.f32 %v872_v15, %v283_v24  ;;  %v985_v27 = vmul.f32 %v283_v24, %v283_v24  ;;  %v285_v28 = vpop.f32.mrb[5].mxu0  ;;  %v1819_v29 = vpop.f32.mrb[5].mxu1 }
 0x103   :  { %812 = vst [vmem:[%s2154_s2 + $0x28] sm:$0xff] %v285_v28  ;;  %v894_v30 = vadd.f32 %v893_v20, %v285_v28  ;;  %v986_v31 = vmul.f32 %v285_v28, %v285_v28  ;;  %v287_v32 = vpop.f32.mrb[6].mxu0  ;;  %v1824_v33 = vpop.f32.mrb[6].mxu1 }
 0x104   :  { %v1014_v34 = vadd.f32 %v1013_v22, %v985_v27  ;;  %813 = vst [vmem:[%s2154_s2 + $0x30] sm:$0xff] %v287_v32  ;;  %v874_v35 = vadd.f32 %v873_v26, %v287_v32  ;;  %v987_v36 = vmul.f32 %v287_v32, %v287_v32  ;;  %v289_v37 = vpop.f32.mrb[7].mxu0  ;;  %v1829_v38 = vpop.f32.mrb[7].mxu1 }
 0x105   :  { %v1035_v39 = vadd.f32 %v1034_v23, %v986_v31  ;;  %814 = vst [vmem:[%s2154_s2 + $0x38] sm:$0xff] %v289_v37  ;;  %v895_v40 = vadd.f32 %v894_v30, %v289_v37  ;;  %v988_v41 = vmul.f32 %v289_v37, %v289_v37 }
 0x106   :  { %v1015_v42 = vadd.f32 %v1014_v34, %v987_v36 }
 0x107   :  { %v1036_v43 = vadd.f32 %v1035_v39, %v988_v41 }
 0x109   :  { %v293_v44 = vpop.f32.mrb[8].mxu0  ;;  %v1834_v45 = vpop.f32.mrb[8].mxu1 }
 0x10a   :  { %815 = vst [vmem:[%s2154_s2 + $0x40] sm:$0xff] %v293_v44  ;;  %v875_v46 = vadd.f32 %v874_v35, %v293_v44  ;;  %v989_v47 = vmul.f32 %v293_v44, %v293_v44  ;;  %v295_v48 = vpop.f32.mrb[9].mxu0  ;;  %v1839_v49 = vpop.f32.mrb[9].mxu1 }
 0x10b   :  { %816 = vst [vmem:[%s2154_s2 + $0x48] sm:$0xff] %v295_v48  ;;  %v896_v50 = vadd.f32 %v895_v40, %v295_v48  ;;  %v990_v51 = vmul.f32 %v295_v48, %v295_v48  ;;  %v297_v52 = vpop.f32.mrb[10].mxu0  ;;  %v1844_v53 = vpop.f32.mrb[10].mxu1 }
 0x10c   :  { %v1016_v54 = vadd.f32 %v1015_v42, %v989_v47  ;;  %817 = vst [vmem:[%s2154_s2 + $0x50] sm:$0xff] %v297_v52  ;;  %v876_v55 = vadd.f32 %v875_v46, %v297_v52  ;;  %v991_v56 = vmul.f32 %v297_v52, %v297_v52  ;;  %v299_v57 = vpop.f32.mrb[11].mxu0  ;;  %v1849_v58 = vpop.f32.mrb[11].mxu1 }
 0x10d   :  { %v1037_v59 = vadd.f32 %v1036_v43, %v990_v51  ;;  %818 = vst [vmem:[%s2154_s2 + $0x58] sm:$0xff] %v299_v57  ;;  %v897_v60 = vadd.f32 %v896_v50, %v299_v57  ;;  %v992_v61 = vmul.f32 %v299_v57, %v299_v57 }
 0x10e   :  { %v1017_v62 = vadd.f32 %v1016_v54, %v991_v56 }
 0x10f   :  { %v1038_v63 = vadd.f32 %v1037_v59, %v992_v61 }
 0x111   :  { %v303_v0 = vpop.f32.mrb[12].mxu0  ;;  %v1854_v1 = vpop.f32.mrb[12].mxu1 }
 0x112   :  { %819 = vst [vmem:[%s2154_s2 + $0x60] sm:$0xff] %v303_v0  ;;  %v877_v2 = vadd.f32 %v876_v55, %v303_v0  ;;  %v993_v3 = vmul.f32 %v303_v0, %v303_v0  ;;  %v305_v4 = vpop.f32.mrb[13].mxu0  ;;  %v1859_v5 = vpop.f32.mrb[13].mxu1 }
 0x113   :  { %820 = vst [vmem:[%s2154_s2 + $0x68] sm:$0xff] %v305_v4  ;;  %v898_v6 = vadd.f32 %v897_v60, %v305_v4  ;;  %v994_v7 = vmul.f32 %v305_v4, %v305_v4  ;;  %v307_v8 = vpop.f32.mrb[14].mxu0  ;;  %v1864_v10 = vpop.f32.mrb[14].mxu1 }
 0x114   :  { %v1018_v12 = vadd.f32 %v1017_v62, %v993_v3  ;;  %821 = vst [vmem:[%s2154_s2 + $0x70] sm:$0xff] %v307_v8  ;;  %v878_v14 = vadd.f32 %v877_v2, %v307_v8  ;;  %v995_v15 = vmul.f32 %v307_v8, %v307_v8  ;;  %v309_v16 = vpop.f32.mrb[15].mxu0  ;;  %v1869_v17 = vpop.f32.mrb[15].mxu1 }
 0x115   :  { %v1039_v19 = vadd.f32 %v1038_v63, %v994_v7  ;;  %822 = vst [vmem:[%s2154_s2 + $0x78] sm:$0xff] %v309_v16  ;;  %v899_v20 = vadd.f32 %v898_v6, %v309_v16  ;;  %v996_v21 = vmul.f32 %v309_v16, %v309_v16 }
 0x116   :  { %v1019_v22 = vadd.f32 %v1018_v12, %v995_v15 }
 0x117   :  { %v1040_v23 = vadd.f32 %v1039_v19, %v996_v21 }
 0x119   :  { %v313_v24 = vpop.f32.mrb[16].mxu0 }
 0x11a   :  { %823 = vst [vmem:[%s2154_s2 + $0x80] sm:$0xff] %v313_v24  ;;  %v879_v26 = vadd.f32 %v878_v14, %v313_v24  ;;  %v997_v27 = vmul.f32 %v313_v24, %v313_v24  ;;  %v315_v28 = vpop.f32.mrb[17].mxu0 }
 0x11b   :  { %824 = vst [vmem:[%s2154_s2 + $0x88] sm:$0xff] %v315_v28  ;;  %v900_v30 = vadd.f32 %v899_v20, %v315_v28  ;;  %v998_v31 = vmul.f32 %v315_v28, %v315_v28  ;;  %v317_v32 = vpop.f32.mrb[18].mxu0 }
 0x11c   :  { %v1020_v34 = vadd.f32 %v1019_v22, %v997_v27  ;;  %825 = vst [vmem:[%s2154_s2 + $0x90] sm:$0xff] %v317_v32  ;;  %v880_v35 = vadd.f32 %v879_v26, %v317_v32  ;;  %v999_v36 = vmul.f32 %v317_v32, %v317_v32  ;;  %v319_v37 = vpop.f32.mrb[19].mxu0 }
 0x11d   :  { %v1041_v39 = vadd.f32 %v1040_v23, %v998_v31  ;;  %826 = vst [vmem:[%s2154_s2 + $0x98] sm:$0xff] %v319_v37  ;;  %v901_v40 = vadd.f32 %v900_v30, %v319_v37  ;;  %v1000_v41 = vmul.f32 %v319_v37, %v319_v37 }
 0x11e   :  { %v1021_v42 = vadd.f32 %v1020_v34, %v999_v36 }
 0x11f   :  { %v1042_v43 = vadd.f32 %v1041_v39, %v1000_v41 }
 0x121   :  { %v323_v44 = vpop.f32.mrb[20].mxu0 }
 0x122   :  { %827 = vst [vmem:[%s2154_s2 + $0xa0] sm:$0xff] %v323_v44  ;;  %v881_v46 = vadd.f32 %v880_v35, %v323_v44  ;;  %v1001_v47 = vmul.f32 %v323_v44, %v323_v44  ;;  %v325_v48 = vpop.f32.mrb[21].mxu0 }
 0x123   :  { %828 = vst [vmem:[%s2154_s2 + $0xa8] sm:$0xff] %v325_v48  ;;  %v902_v50 = vadd.f32 %v901_v40, %v325_v48  ;;  %v1002_v51 = vmul.f32 %v325_v48, %v325_v48  ;;  %v327_v52 = vpop.f32.mrb[22].mxu0 }
 0x124   :  { %v1022_v54 = vadd.f32 %v1021_v42, %v1001_v47  ;;  %829 = vst [vmem:[%s2154_s2 + $0xb0] sm:$0xff] %v327_v52  ;;  %v882_v55 = vadd.f32 %v881_v46, %v327_v52  ;;  %v1003_v56 = vmul.f32 %v327_v52, %v327_v52  ;;  %v329_v57 = vpop.f32.mrb[23].mxu0 }
 0x125   :  { %v1043_v59 = vadd.f32 %v1042_v43, %v1002_v51  ;;  %830 = vst [vmem:[%s2154_s2 + $0xb8] sm:$0xff] %v329_v57  ;;  %v903_v60 = vadd.f32 %v902_v50, %v329_v57  ;;  %v1004_v61 = vmul.f32 %v329_v57, %v329_v57 }
 0x126   :  { %v1023_v62 = vadd.f32 %v1022_v54, %v1003_v56 }
 0x127   :  { %v1044_v63 = vadd.f32 %v1043_v59, %v1004_v61 }
 0x129   :  { %v333_v0 = vpop.f32.mrb[24].mxu0 }
 0x12a   :  { %831 = vst [vmem:[%s2154_s2 + $0xc0] sm:$0xff] %v333_v0  ;;  %v883_v2 = vadd.f32 %v882_v55, %v333_v0  ;;  %v1005_v3 = vmul.f32 %v333_v0, %v333_v0  ;;  %v335_v4 = vpop.f32.mrb[25].mxu0 }
 0x12b   :  { %832 = vst [vmem:[%s2154_s2 + $0xc8] sm:$0xff] %v335_v4  ;;  %v904_v6 = vadd.f32 %v903_v60, %v335_v4  ;;  %v1006_v7 = vmul.f32 %v335_v4, %v335_v4  ;;  %v337_v8 = vpop.f32.mrb[26].mxu0 }
 0x12c   :  { %v1024_v12 = vadd.f32 %v1023_v62, %v1005_v3  ;;  %833 = vst [vmem:[%s2154_s2 + $0xd0] sm:$0xff] %v337_v8  ;;  %v884_v14 = vadd.f32 %v883_v2, %v337_v8  ;;  %v1007_v15 = vmul.f32 %v337_v8, %v337_v8  ;;  %v339_v16 = vpop.f32.mrb[27].mxu0 }
 0x12d   :  { %v1045_v19 = vadd.f32 %v1044_v63, %v1006_v7  ;;  %834 = vst [vmem:[%s2154_s2 + $0xd8] sm:$0xff] %v339_v16  ;;  %v905_v20 = vadd.f32 %v904_v6, %v339_v16  ;;  %v1008_v21 = vmul.f32 %v339_v16, %v339_v16 }
 0x12e   :  { %v1025_v22 = vadd.f32 %v1024_v12, %v1007_v15 }
 0x12f   :  { %v1046_v23 = vadd.f32 %v1045_v19, %v1008_v21 }
 0x131   :  { %v343_v24 = vpop.f32.mrb[28].mxu0 }
 0x132   :  { %835 = vst [vmem:[%s2154_s2 + $0xe0] sm:$0xff] %v343_v24  ;;  %v885_v26 = vadd.f32 %v884_v14, %v343_v24  ;;  %v1009_v27 = vmul.f32 %v343_v24, %v343_v24  ;;  %v345_v28 = vpop.f32.mrb[29].mxu0 }
 0x133   :  { %836 = vst [vmem:[%s2154_s2 + $0xe8] sm:$0xff] %v345_v28  ;;  %v906_v30 = vadd.f32 %v905_v20, %v345_v28  ;;  %v1010_v31 = vmul.f32 %v345_v28, %v345_v28  ;;  %v347_v32 = vpop.f32.mrb[30].mxu0 }
 0x134   :  { %v1026_v34 = vadd.f32 %v1025_v22, %v1009_v27  ;;  %837 = vst [vmem:[%s2154_s2 + $0xf0] sm:$0xff] %v347_v32  ;;  %v1919_v35 = vadd.f32 %v885_v26, %v347_v32  ;;  %v1011_v36 = vmul.f32 %v347_v32, %v347_v32  ;;  %v349_v37 = vpop.f32.mrb[31].mxu0 }
 0x135   :  { %v1047_v39 = vadd.f32 %v1046_v23, %v1010_v31  ;;  %838 = vst [vmem:[%s2154_s2 + $0xf8] sm:$0xff] %v349_v37  ;;  %v1924_v40 = vadd.f32 %v906_v30, %v349_v37  ;;  %v1012_v41 = vmul.f32 %v349_v37, %v349_v37 }
 0x136   :  { %v1926_v42 = vadd.f32 %v1026_v34, %v1011_v36 }
 0x137   :  { %v1928_v43 = vadd.f32 %v1047_v39, %v1012_v41 }
 0x139   :  { %v728_v44 = vpop.f32.mrb[32].mxu0  ;;  %v1930_v46 = vpop.f32.mrb[16].mxu1 }
 0x13a   :  { %v729_v47 = vadd.f32 %v728_v44, %v1794_v9  ;;  %1310 = vst [vmem:[%s2154_s2 + $0x180] sm:$0xff] %v1930_v46  ;;  %v730_v48 = vpop.f32.mrb[33].mxu0  ;;  %v1937_v50 = vpop.f32.mrb[17].mxu1 }
 0x13b   :  { %v731_v51 = vadd.f32 %v730_v48, %v1799_v11  ;;  %1311 = vst [vmem:[%s2154_s2 + $0x188] sm:$0xff] %v1937_v50  ;;  %v732_v52 = vpop.f32.mrb[34].mxu0  ;;  %v1944_v54 = vpop.f32.mrb[18].mxu1 }
 0x13c   :  { %1294 = vst [vmem:[%s2154_s2 + $0x100] sm:$0xff] %v729_v47  ;;  %v733_v9 = vadd.f32 %v732_v52, %v1804_v13  ;;  %1312 = vst [vmem:[%s2154_s2 + $0x190] sm:$0xff] %v1944_v54  ;;  %v734_v11 = vpop.f32.mrb[35].mxu0  ;;  %v1954_v55 = vpop.f32.mrb[19].mxu1  ;;  %v1055_v56 = vmul.f32 %v729_v47, %v729_v47 }
 0x13d   :  { %1295 = vst [vmem:[%s2154_s2 + $0x108] sm:$0xff] %v731_v51  ;;  %1313 = vst [vmem:[%s2154_s2 + $0x198] sm:$0xff] %v1954_v55  ;;  %v735_v59 = vadd.f32 %v734_v11, %v1809_v18  ;;  %v1056_v61 = vmul.f32 %v731_v51, %v731_v51 }
 0x13e   :  { %1296 = vst [vmem:[%s2154_s2 + $0x110] sm:$0xff] %v733_v9  ;;  %v914_v13 = vadd.f32 %v733_v9, %v729_v47  ;;  %v1057_v57 = vmul.f32 %v733_v9, %v733_v9 }
 0x13f   :  { %1297 = vst [vmem:[%s2154_s2 + $0x118] sm:$0xff] %v735_v59  ;;  %v935_v62 = vadd.f32 %v735_v59, %v731_v51  ;;  %v1058_v63 = vmul.f32 %v735_v59, %v735_v59 }
 0x140   :  { %v1087_v60 = vadd.f32 %v1057_v57, %v1055_v56 }
 0x141   :  { %v738_v0 = vpop.f32.mrb[36].mxu0  ;;  %v1970_v2 = vpop.f32.mrb[20].mxu1  ;;  %v1108_v6 = vadd.f32 %v1058_v63, %v1056_v61 }
 0x142   :  { %v739_v3 = vadd.f32 %v738_v0, %v1814_v25  ;;  %1314 = vst [vmem:[%s2154_s2 + $0x1a0] sm:$0xff] %v1970_v2  ;;  %v740_v4 = vpop.f32.mrb[37].mxu0  ;;  %v1977_v18 = vpop.f32.mrb[21].mxu1 }
 0x143   :  { %v741_v7 = vadd.f32 %v740_v4, %v1819_v29  ;;  %1315 = vst [vmem:[%s2154_s2 + $0x1a8] sm:$0xff] %v1977_v18  ;;  %v742_v8 = vpop.f32.mrb[38].mxu0  ;;  %v1984_v12 = vpop.f32.mrb[22].mxu1 }
 0x144   :  { %1298 = vst [vmem:[%s2154_s2 + $0x120] sm:$0xff] %v739_v3  ;;  %v915_v25 = vadd.f32 %v914_v13, %v739_v3  ;;  %v1059_v14 = vmul.f32 %v739_v3, %v739_v3  ;;  %v743_v15 = vadd.f32 %v742_v8, %v1824_v33  ;;  %1316 = vst [vmem:[%s2154_s2 + $0x1b0] sm:$0xff] %v1984_v12  ;;  %v744_v29 = vpop.f32.mrb[39].mxu0  ;;  %v1994_v16 = vpop.f32.mrb[23].mxu1 }
 0x145   :  { %1299 = vst [vmem:[%s2154_s2 + $0x128] sm:$0xff] %v741_v7  ;;  %v936_v19 = vadd.f32 %v935_v62, %v741_v7  ;;  %v1060_v20 = vmul.f32 %v741_v7, %v741_v7  ;;  %v745_v21 = vadd.f32 %v744_v29, %v1829_v38  ;;  %1317 = vst [vmem:[%s2154_s2 + $0x1b8] sm:$0xff] %v1994_v16 }
 0x146   :  { %v1088_v33 = vadd.f32 %v1087_v60, %v1059_v14  ;;  %1300 = vst [vmem:[%s2154_s2 + $0x130] sm:$0xff] %v743_v15  ;;  %v916_v22 = vadd.f32 %v915_v25, %v743_v15  ;;  %v1061_v23 = vmul.f32 %v743_v15, %v743_v15 }
 0x147   :  { %v1109_v24 = vadd.f32 %v1108_v6, %v1060_v20  ;;  %1301 = vst [vmem:[%s2154_s2 + $0x138] sm:$0xff] %v745_v21  ;;  %v937_v26 = vadd.f32 %v936_v19, %v745_v21  ;;  %v1062_v27 = vmul.f32 %v745_v21, %v745_v21 }
 0x148   :  { %v1089_v38 = vadd.f32 %v1088_v33, %v1061_v23 }
 0x149   :  { %v1110_v28 = vadd.f32 %v1109_v24, %v1062_v27  ;;  %v748_v30 = vpop.f32.mrb[40].mxu0  ;;  %v2010_v31 = vpop.f32.mrb[24].mxu1  ;;  %v1072_v27 = vmul.f32 %v1937_v50, %v1937_v50 }
 0x14a   :  { %v749_v32 = vadd.f32 %v748_v30, %v1834_v45  ;;  %1318 = vst [vmem:[%s2154_s2 + $0x1c0] sm:$0xff] %v2010_v31  ;;  %v750_v34 = vpop.f32.mrb[41].mxu0  ;;  %v2017_v36 = vpop.f32.mrb[25].mxu1  ;;  %v1073_v30 = vmul.f32 %v1944_v54, %v1944_v54 }
 0x14b   :  { %v751_v37 = vadd.f32 %v750_v34, %v1839_v49  ;;  %1319 = vst [vmem:[%s2154_s2 + $0x1c8] sm:$0xff] %v2017_v36  ;;  %v752_v39 = vpop.f32.mrb[42].mxu0  ;;  %v2024_v41 = vpop.f32.mrb[26].mxu1 }
 0x14c   :  { %1302 = vst [vmem:[%s2154_s2 + $0x140] sm:$0xff] %v749_v32  ;;  %v917_v45 = vadd.f32 %v916_v22, %v749_v32  ;;  %v1063_v44 = vmul.f32 %v749_v32, %v749_v32  ;;  %v753_v47 = vadd.f32 %v752_v39, %v1844_v53  ;;  %1320 = vst [vmem:[%s2154_s2 + $0x1d0] sm:$0xff] %v2024_v41  ;;  %v754_v49 = vpop.f32.mrb[43].mxu0  ;;  %v2034_v48 = vpop.f32.mrb[27].mxu1 }
 0x14d   :  { %1303 = vst [vmem:[%s2154_s2 + $0x148] sm:$0xff] %v751_v37  ;;  %v938_v51 = vadd.f32 %v937_v26, %v751_v37  ;;  %v1064_v52 = vmul.f32 %v751_v37, %v751_v37  ;;  %v755_v9 = vadd.f32 %v754_v49, %v1849_v58  ;;  %1321 = vst [vmem:[%s2154_s2 + $0x1d8] sm:$0xff] %v2034_v48 }
 0x14e   :  { %v1090_v53 = vadd.f32 %v1089_v38, %v1063_v44  ;;  %1304 = vst [vmem:[%s2154_s2 + $0x150] sm:$0xff] %v753_v47  ;;  %v918_v11 = vadd.f32 %v917_v45, %v753_v47  ;;  %v1065_v56 = vmul.f32 %v753_v47, %v753_v47  ;;  %v1074_v37 = vmul.f32 %v1954_v55, %v1954_v55 }
 0x14f   :  { %v1111_v13 = vadd.f32 %v1110_v28, %v1064_v52  ;;  %1305 = vst [vmem:[%s2154_s2 + $0x158] sm:$0xff] %v755_v9  ;;  %v939_v57 = vadd.f32 %v938_v51, %v755_v9  ;;  %v1066_v59 = vmul.f32 %v755_v9, %v755_v9  ;;  %v1077_v52 = vmul.f32 %v1984_v12, %v1984_v12 }
 0x150   :  { %v1091_v58 = vadd.f32 %v1090_v53, %v1065_v56  ;;  %v908_v53 = vrot.slane %v1924_v40, 4 }
 0x151   :  { %v1112_v60 = vadd.f32 %v1111_v13, %v1066_v59  ;;  %v758_v61 = vpop.f32.mrb[44].mxu0  ;;  %v2050_v62 = vpop.f32.mrb[28].mxu1  ;;  %v1028_v13 = vrot.slane %v1926_v42, 4 }
 0x152   :  { %v759_v63 = vadd.f32 %v758_v61, %v1854_v1  ;;  %1322 = vst [vmem:[%s2154_s2 + $0x1e0] sm:$0xff] %v2050_v62  ;;  %v760_v0 = vpop.f32.mrb[45].mxu0  ;;  %v2057_v3 = vpop.f32.mrb[29].mxu1 }
 0x153   :  { %v761_v4 = vadd.f32 %v760_v0, %v1859_v5  ;;  %1323 = vst [vmem:[%s2154_s2 + $0x1e8] sm:$0xff] %v2057_v3  ;;  %v762_v6 = vpop.f32.mrb[46].mxu0  ;;  %v2064_v7 = vpop.f32.mrb[30].mxu1 }
 0x154   :  { %1306 = vst [vmem:[%s2154_s2 + $0x160] sm:$0xff] %v759_v63  ;;  %v919_v1 = vadd.f32 %v918_v11, %v759_v63  ;;  %v1067_v8 = vmul.f32 %v759_v63, %v759_v63  ;;  %v763_v25 = vadd.f32 %v762_v6, %v1864_v10  ;;  %1324 = vst [vmem:[%s2154_s2 + $0x1f0] sm:$0xff] %v2064_v7  ;;  %v764_v5 = vpop.f32.mrb[47].mxu0  ;;  %v2074_v14 = vpop.f32.mrb[31].mxu1 }
 0x155   :  { %1307 = vst [vmem:[%s2154_s2 + $0x168] sm:$0xff] %v761_v4  ;;  %v940_v15 = vadd.f32 %v939_v57, %v761_v4  ;;  %v1068_v29 = vmul.f32 %v761_v4, %v761_v4  ;;  %v765_v19 = vadd.f32 %v764_v5, %v1869_v17  ;;  %1325 = vst [vmem:[%s2154_s2 + $0x1f8] sm:$0xff] %v2074_v14 }
 0x156   :  { %v1092_v10 = vadd.f32 %v1091_v58, %v1067_v8  ;;  %1308 = vst [vmem:[%s2154_s2 + $0x170] sm:$0xff] %v763_v25  ;;  %v920_v20 = vadd.f32 %v919_v1, %v763_v25  ;;  %v1069_v21 = vmul.f32 %v763_v25, %v763_v25  ;;  %v1071_v17 = vmul.f32 %v1930_v46, %v1930_v46 }
 0x157   :  { %v1113_v33 = vadd.f32 %v1112_v60, %v1068_v29  ;;  %1309 = vst [vmem:[%s2154_s2 + $0x178] sm:$0xff] %v765_v19  ;;  %v941_v22 = vadd.f32 %v940_v15, %v765_v19  ;;  %v1070_v23 = vmul.f32 %v765_v19, %v765_v19  ;;  %v1049_v58 = vrot.slane %v1928_v43, 4 }
 0x158   :  { %v921_v24 = vadd.f32 %v920_v20, %v1930_v46  ;;  %v1093_v26 = vadd.f32 %v1092_v10, %v1069_v21  ;;  %v1075_v46 = vmul.f32 %v1970_v2, %v1970_v2  ;;  %v909_v6 = vadd.f32 %v908_v53, %v1924_v40 }
 0x159   :  { %v942_v38 = vadd.f32 %v941_v22, %v1937_v50  ;;  %v1114_v28 = vadd.f32 %v1113_v33, %v1070_v23  ;;  %v1076_v50 = vmul.f32 %v1977_v18, %v1977_v18  ;;  %v1029_v25 = vadd.f32 %v1028_v13, %v1926_v42 }
 0x15a   :  { %v922_v32 = vadd.f32 %v921_v24, %v1944_v54  ;;  %v1094_v34 = vadd.f32 %v1093_v26, %v1071_v17  ;;  %v887_v54 = vrot.slane %v1919_v35, 4  ;;  %v1050_v15 = vadd.f32 %v1049_v58, %v1928_v43 }
 0x15b   :  { %v943_v39 = vadd.f32 %v942_v38, %v1954_v55  ;;  %v1115_v45 = vadd.f32 %v1114_v28, %v1072_v27  ;;  %v1085_v42 = vmul.f32 %v2064_v7, %v2064_v7  ;;  %v910_v20 = vrot.slane %v909_v6, 2 }
 0x15c   :  { %v923_v44 = vadd.f32 %v922_v32, %v1970_v2  ;;  %v1095_v47 = vadd.f32 %v1094_v34, %v1073_v30  ;;  %v1078_v2 = vmul.f32 %v1994_v16, %v1994_v16  ;;  %v888_v63 = vadd.f32 %v887_v54, %v1919_v35 }
 0x15d   :  { %v944_v49 = vadd.f32 %v943_v39, %v1977_v18  ;;  %v1116_v51 = vadd.f32 %v1115_v45, %v1074_v37  ;;  %v1079_v18 = vmul.f32 %v2010_v31, %v2010_v31  ;;  %v1030_v33 = vrot.slane %v1029_v25, 2 }
 0x15e   :  { %v1096_v9 = vadd.f32 %v1095_v47, %v1075_v46  ;;  %v924_v55 = vadd.f32 %v923_v44, %v1984_v12  ;;  %v1080_v12 = vmul.f32 %v2017_v36, %v2017_v36  ;;  %v889_v19 = vrot.slane %v888_v63, 2 }
 0x15f   :  { %v1117_v11 = vadd.f32 %v1116_v51, %v1076_v50  ;;  %v945_v56 = vadd.f32 %v944_v49, %v1994_v16  ;;  %v1081_v16 = vmul.f32 %v2024_v41, %v2024_v41  ;;  %v1051_v17 = vrot.slane %v1050_v15, 2 }
 0x160   :  { %v925_v57 = vadd.f32 %v924_v55, %v2010_v31  ;;  %v1097_v59 = vadd.f32 %v1096_v9, %v1077_v52  ;;  %v1082_v31 = vmul.f32 %v2034_v48, %v2034_v48  ;;  %v890_v26 = vadd.f32 %v889_v19, %v888_v63 }
 0x161   :  { %v946_v60 = vadd.f32 %v945_v56, %v2017_v36  ;;  %v1118_v61 = vadd.f32 %v1117_v11, %v1078_v2  ;;  %v1083_v36 = vmul.f32 %v2050_v62, %v2050_v62  ;;  %v911_v28 = vadd.f32 %v910_v20, %v909_v6 }
 0x162   :  { %v926_v0 = vadd.f32 %v925_v57, %v2024_v41  ;;  %v1098_v4 = vadd.f32 %v1097_v59, %v1079_v18  ;;  %v1084_v41 = vmul.f32 %v2057_v3, %v2057_v3  ;;  %v1031_v32 = vadd.f32 %v1030_v33, %v1029_v25 }
 0x163   :  { %v947_v1 = vadd.f32 %v946_v60, %v2034_v48  ;;  %v1119_v8 = vadd.f32 %v1118_v61, %v1080_v12  ;;  %v1485_v39 = vmov 1966171168   ;;  %v1052_v46 = vadd.f32 %v1051_v17, %v1050_v15 }
 0x164   :  { %v927_v35 = vadd.f32 %v926_v0, %v2050_v62  ;;  %v1099_v5 = vadd.f32 %v1098_v4, %v1081_v16  ;;  %v1086_v62 = vmul.f32 %v2074_v14, %v2074_v14  ;;  %v962_v45 = vunpack.c.l.s4 %v1485_v39 }
 0x165   :  { %v948_v40 = vadd.f32 %v947_v1, %v2057_v3  ;;  %v1120_v29 = vadd.f32 %v1119_v8, %v1082_v31  ;;  %v964_v44 = vlaneseq  ;;  %v891_v50 = vrot.slane %v890_v26, 1 }
 0x166   :  { %v928_v48 = vadd.f32 %v927_v35, %v2064_v7  ;;  %v1100_v10 = vadd.f32 %v1099_v5, %v1083_v36  ;;  %v912_v54 = vrot.slane %v911_v28, 1  ;;  %v1032_v55 = vrot.slane %v1031_v32, 1 }
 0x167   :  { %v949_v21 = vadd.f32 %v948_v40, %v2074_v14  ;;  %v1121_v43 = vadd.f32 %v1120_v29, %v1084_v41  ;;  %v963_v11 = vunpack.c.0.s8 %v962_v45  ;;  %v1053_v56 = vrot.slane %v1052_v46, 1 }
 0x168   :  { %v929_v22 = vrot.slane %v928_v48, 4  ;;  %v1101_v23 = vadd.f32 %v1100_v10, %v1085_v42  ;;  %v965_v18 = vshrl.u32 %v964_v44, 7  ;;  %v892_v59 = vadd.f32 %v891_v50, %v890_v26 }
 0x169   :  { %v950_v3 = vrot.slane %v949_v21, 4  ;;  %v1122_v24 = vadd.f32 %v1121_v43, %v1086_v62  ;;  %v913_v60 = vadd.f32 %v912_v54, %v911_v28  ;;  %v1033_v16 = vadd.f32 %v1032_v55, %v1031_v32 }
 0x16a   :  { %v930_v27 = vadd.f32 %v929_v22, %v928_v48  ;;  %v1102_v38 = vrot.slane %v1101_v23, 4  ;;  %v1054_v6 = vadd.f32 %v1053_v56, %v1052_v46  ;;  %v966_v1 = vsub.s32 %v963_v11, %v965_v18 }
 0x16b   :  { %v951_v30 = vadd.f32 %v950_v3, %v949_v21  ;;  %v1123_v7 = vrot.slane %v1122_v24, 4  ;;  %vm978_vm1 = vcmp.lt.s32.totalorder %v964_v44, 256 }
 0x16c   :  { %v931_v34 = vrot.slane %v930_v27, 2  ;;  %v1103_v37 = vadd.f32 %v1102_v38, %v1101_v23 }
 0x16d   :  { %v952_v14 = vrot.slane %v951_v30, 2  ;;  %v1124_v47 = vadd.f32 %v1123_v7, %v1122_v24 }
 0x16e   :  { %v932_v49 = vadd.f32 %v931_v34, %v930_v27  ;;  %v1104_v51 = vrot.slane %v1103_v37, 2 }
 0x16f   :  { %v953_v52 = vadd.f32 %v952_v14, %v951_v30  ;;  %v1125_v9 = vrot.slane %v1124_v47, 2 }
 0x170   :  { %v933_v53 = vrot.slane %v932_v49, 1  ;;  %v1105_v2 = vadd.f32 %v1104_v51, %v1103_v37 }
 0x171   :  { %v954_v13 = vrot.slane %v953_v52, 1  ;;  %v1126_v57 = vadd.f32 %v1125_v9, %v1124_v47 }
 0x172   :  { %v934_v58 = vadd.f32 %v933_v53, %v932_v49  ;;  %v1106_v12 = vrot.slane %v1105_v2, 1 }
 0x173   :  { %v955_v61 = vadd.f32 %v954_v13, %v953_v52  ;;  %v1127_v63 = vrot.slane %v1126_v57, 1 }
 0x174   :  { %v956_v0 = vadd.f32 %v934_v58, %v892_v59  ;;  %v1107_v4 = vadd.f32 %v1106_v12, %v1105_v2 }
 0x175   :  { %v957_v31 = vadd.f32 %v955_v61, %v913_v60  ;;  %v1128_v8 = vadd.f32 %v1127_v63, %v1126_v57 }
 0x176   :  { %v1129_v25 = vadd.f32 %v1107_v4, %v1033_v16 }
 0x177   :  { %v960_v36 = vcombine.low %v956_v0, %v957_v31  ;;  %v1130_v35 = vadd.f32 %v1128_v8, %v1054_v6 }
 0x179   :  { %v967_v5 = vrot.slane %v960_v36, %v966_v1  ;;  %v1133_v15 = vcombine.low %v1129_v25, %v1130_v35 }
 0x17b   :  { %v974_v41 = vrot.slane %v967_v5, %v966_v1  ;;  %v1140_v40 = vrot.slane %v1133_v15, %v966_v1 }
 0x17d   :  { %980 = vst.msk [vmem:[%s2155_s3] sm:$0x3] %vm978_vm1, %v974_v41  ;;  %v1147_v29 = vrot.slane %v1140_v40, %v966_v1 }
 0x17f   :  { %1149 = vst.msk [vmem:[%s2156_s4] sm:$0x3] %vm978_vm1, %v1147_v29 }

// kernel: tile.12
= control target key start
LH: loop header
LB: loop body
LE: loop exit
PB: predicated region body
PF: predicated region fallthrough
CT: control target
= control target key end

     0   :  { %s67_s10 = smov 112   ;;  %s68_s11 = smov 80   ;;  %vm3_vm0 = vcmask 130048   ;;  %vm9_vm1 = vcmask 1048448   ;;  %vm15_vm2 = vcmask 917248   ;;  %vm21_vm3 = vcmask 786048   ;;  %s111_s0 = inlined_call_operand.vmem [shape: f32[8,16], index: 0, kind: input, shape index: {}]   ;;  %s112_s1 = inlined_call_operand.vmem [shape: f32[128], index: 1, kind: output, shape index: {}]  }
   0x1   :  { %v53_v0 = vld [vmem:[%s111_s0 + $0x7] sm:$0x1]   ;;  %v55_v1 = vld [vmem:[%s111_s0 + $0x5] sm:$0x1]   ;;  %v54_v2 = vld [vmem:[%s111_s0 + $0x6] sm:$0x1]  }
   0x2   :  { %7 = vrot.lane.b32.xlu0 %v53_v0, %s67_s10  ;;  %19 = vrot.lane.b32.xlu1 %v55_v1, %s68_s11  ;;  %v56_v3 = vld [vmem:[%s111_s0 + $0x4] sm:$0x1]   ;;  %v2_v4 = vld [vmem:[%s111_s0] sm:$0x1]   ;;  %s69_s18 = smov 96   ;;  %s70_s19 = smov 64  }
   0x3   :  { %4 = vst.msk [vmem:[#allocation0] sm:$0x1] %vm3_vm0, %v2_v4   ;;  %v57_v5 = vld [vmem:[%s111_s0 + $0x3] sm:$0x1]   ;;  %v58_v6 = vld [vmem:[%s111_s0 + $0x2] sm:$0x1]  }
   0x4   :  { %s71_s24 = smov 48   ;;  %s72_s25 = smov 32   ;;  %v59_v7 = vld [vmem:[%s111_s0 + $0x1] sm:$0x1]   ;;  %vm27_vm4 = vcmask 654848   ;;  %vm33_vm5 = vcmask 523648  }
   0x5   :  { %s73_s0 = smov 16   ;;  %vm39_vm6 = vcmask 392448   ;;  %vm45_vm7 = vcmask 261248  }
   0x6   :  { %13 = vrot.lane.b32.xlu0 %v54_v2, %s69_s18  ;;  %25 = vrot.lane.b32.xlu1 %v56_v3, %s70_s19 }
   0xa   :  { %31 = vrot.lane.b32.xlu0 %v57_v5, %s71_s24  ;;  %37 = vrot.lane.b32.xlu1 %v58_v6, %s72_s25 }
   0xe   :  { %43 = vrot.lane.b32.xlu0 %v59_v7, %s73_s0 }
  0x74   :  { %v8_v8 = vpop.permute.xlu0 %7   ;;  %v20_v9 = vpop.permute.xlu1 %19  }
  0x75   :  { %10 = vst.msk [vmem:[#allocation0] sm:$0x1] %vm9_vm1, %v8_v8  }
  0x78   :  { %v14_v10 = vpop.permute.xlu0 %13   ;;  %v26_v11 = vpop.permute.xlu1 %25  }
  0x79   :  { %16 = vst.msk [vmem:[#allocation0] sm:$0x1] %vm15_vm2, %v14_v10  }
  0x7a   :  { %22 = vst.msk [vmem:[#allocation0] sm:$0x1] %vm21_vm3, %v20_v9  }
  0x7b   :  { %28 = vst.msk [vmem:[#allocation0] sm:$0x1] %vm27_vm4, %v26_v11  }
  0x7c   :  { %v32_v12 = vpop.permute.xlu0 %31   ;;  %v38_v13 = vpop.permute.xlu1 %37  }
  0x7d   :  { %34 = vst.msk [vmem:[#allocation0] sm:$0x1] %vm33_vm5, %v32_v12  }
  0x7e   :  { %40 = vst.msk [vmem:[#allocation0] sm:$0x1] %vm39_vm6, %v38_v13  }
  0x80   :  { %v44_v14 = vpop.permute.xlu0 %43  }
  0x81   :  { %46 = vst.msk [vmem:[#allocation0] sm:$0x1] %vm45_vm7, %v44_v14  }
  0x88   :  { %v50_v15 = vld [vmem:[#allocation0] sm:$0x1] }
  0x89   :  { %52 = vst [vmem:[%s112_s1] sm:$0x1] %v50_v15 }

</bundles_post_ra>
